<compile_context>
chip_gen: v7x
topology: tpu7x:2x2x1
jax: 0.10.0
libtpu: 0.0.40
codegen_flags: <defaults>
</compile_context>

<pallas_src>
import functools

import jax
import jax.numpy as jnp
from jax.experimental import pallas as pl
from jax.experimental.pallas import tpu as pltpu


def _round_up(x, m):
    return (x + m - 1) // m * m


def _mhea_kernel(num_heads, d_o, dim_atten, dim_edge, out_pad,
                 qev_ref,
                 rhs1_ref, b1_ref, keep1_ref,
                 rhs2_ref, b2_ref, keep2_ref,
                 rhs3_ref, b3_ref,
                 summat_top_ref, summat_ref,
                 out_ref):
    f32 = jnp.float32
    bf16 = jnp.bfloat16
    H = num_heads

    # bf16 activation tile goes straight into the MXU (f32 accumulation), no f32 upcast.
    qev = qev_ref[...]

    # ---- stage 1 (one fused matmul): [v_p | h1 | q_p | e_p] -----------------------
    s1 = jnp.dot(qev, rhs1_ref[...], preferred_element_type=f32) + b1_ref[...]
    # Column-masked ReLU: keep1 == 0 on the h1 columns, 1 elsewhere, so
    #   max(s1, s1*keep1) == max(s1, 0) on the ReLU columns and s1 otherwise.
    s1 = jnp.maximum(s1, s1 * keep1_ref[...])

    # ---- stage 2 (one fused matmul): [ef | hid] ------------------------------------
    s2 = jnp.dot(s1.astype(bf16), rhs2_ref[...],
                 preferred_element_type=f32) + b2_ref[...]
    s2 = jnp.maximum(s2, s2 * keep2_ref[...])   # ReLU only on the hid columns

    # ---- stage 3: attention logits, flat per-head layout o*H + h -------------------
    logits = jnp.dot(s2.astype(bf16), rhs3_ref[...],
                     preferred_element_type=f32) + b3_ref[...]

    # per-head max over the d_o positions of each head: halving tree over contiguous
    # half-slabs (ceil(log2(d_o)) maxima instead of d_o-1 narrow H-lane slices)
    n, m_h = d_o, logits
    while n > 1:
        half = n // 2
        red = jnp.maximum(m_h[:, :half * H], m_h[:, half * H:2 * half * H])
        if n % 2:
            red = jnp.concatenate([red, m_h[:, 2 * half * H:]], axis=1)
            n = half + 1
        else:
            n = half
        m_h = red

    # broadcast per-head max / per-head sum via tiny constant 0/1 matmuls (MXU slot)
    m_full = jnp.dot(m_h, summat_top_ref[...], preferred_element_type=f32)
    ex = jnp.exp(logits - m_full)
    s_full = jnp.dot(ex, summat_ref[...], preferred_element_type=f32)
    inv = pl.reciprocal(s_full, approx=True)
    inv = inv * (2.0 - s_full * inv)            # one Newton step -> full f32 accuracy
    prob = ex * inv

    # x = einsum('bm,bm->bm', prob.reshape_as(value), value_projected)
    # v_p sits at lane 0 of s1 by construction -> no lane shift for the multiply.
    x = prob * s1[:, :dim_atten]
    ef = s2[:, :dim_edge]

    # single lane-dense (out_pad % 128 == 0) output slab: [x | ef | prob | 0-pad]
    pieces = [x, ef, prob]
    pad = out_pad - (2 * dim_atten + dim_edge)
    if pad:
        pieces.append(jnp.zeros((x.shape[0], pad), f32))
    out_ref[...] = jnp.concatenate(pieces, axis=1).astype(out_ref.dtype)


def _vmem_capacity_bytes():
    """Generation-aware physical VMEM query; conservative fallback = v7x per-TC 64 MiB."""
    try:
        cap = int(pltpu.get_tpu_info().vmem_capacity_bytes)
        if cap > 0:
            return cap
    except Exception:
        pass
    return 64 * 1024 * 1024


def _pick_tile_b(batch, requested, in_pad, out_pad, out_bytes, tile_budget):
    # Rough per-row VMEM bytes: double-buffered bf16 input tile + double-buffered output
    # tile + the f32 intermediates materialized in-kernel (stage slabs, softmax, concat).
    per_row = (2 * in_pad * 2
               + 2 * out_pad * out_bytes
               + 4 * (in_pad + 3 * out_pad))
    cap = max(8, tile_budget // per_row)
    t = max(8, min(requested, batch, cap))
    return _round_up(t, 8)


def multi_headed_edge_attention(query, edge, value, params, *, num_heads,
                                tile_b=4096, act_dtype=jnp.bfloat16,
                                out_dtype=jnp.bfloat16, return_dtype=jnp.float32):
    B, dim_node = query.shape
    dim_edge = edge.shape[1]
    dim_atten = params["wv"].shape[1]
    H = num_heads
    assert dim_node % H == 0 and dim_edge % H == 0 and dim_atten % H == 0
    dn, de, da = dim_node, dim_edge, dim_atten
    d_o = da // H

    in_width = 2 * dn + de
    in_pad = _round_up(in_width, 128)                 # lane-dense bf16 input slab
    s1w = da + (dn + de) + dn + de                    # [v_p | h1 | q_p | e_p]
    s2w = de + (dn + de)                              # [ef | hid]
    out_width = da + de + da                          # [x | ef | prob]
    out_pad = _round_up(out_width, 128)               # lane-dense output slab

    # ---- fold parameters into a handful of fused matrices (once, outside the grid) ----
    f32 = jnp.float32
    eye_h = jnp.eye(H, dtype=f32)

    # stage-1 fused RHS: qev = [q | e | v] (zero-padded to in_pad) -> [v_p | h1 | q_p | e_p]
    rhs1 = jnp.zeros((in_pad, s1w), f32)
    rhs1 = rhs1.at[dn + de:2 * dn + de, 0:da].set(params["wv"])
    rhs1 = rhs1.at[0:in_width, da:da + dn + de].set(params["we1"])
    rhs1 = rhs1.at[0:dn, da + dn + de:da + dn + de + dn].set(params["wq"])
    rhs1 = rhs1.at[dn:dn + de, da + 2 * dn + de:].set(params["wep"])
    b1 = jnp.concatenate([params["bv"], params["be1"],
                          params["bq"], params["bep"]])[None, :]
    keep1 = jnp.ones((1, s1w), f32).at[:, da:da + dn + de].set(0.0)   # ReLU on h1 only

    # stage-2 fused RHS: [v_p | h1 | q_p | e_p] -> [ef | hid]  (v_p rows stay zero)
    # per-head Conv1d(k=1) layer-1 as kron(A1, I_H) in the flat c*H + h layout.
    rhs2 = jnp.zeros((s1w, s2w), f32)
    rhs2 = rhs2.at[da:da + dn + de, 0:de].set(params["we2"])
    rhs2 = rhs2.at[da + dn + de:, de:].set(jnp.kron(params["A1"], eye_h))
    b2 = jnp.concatenate([params["be2"], jnp.repeat(params["bc1"], H)])[None, :]
    keep2 = jnp.ones((1, s2w), f32).at[:, de:].set(0.0)               # ReLU on hid only

    # stage-3 RHS: [ef | hid] -> logits (flat o*H + h); ef rows stay zero.
    rhs3 = jnp.zeros((s2w, da), f32)
    rhs3 = rhs3.at[de:, :].set(jnp.kron(params["A2"], eye_h))
    b3 = jnp.repeat(params["bc2"], H)[None, :]

    # constant 0/1 "same head" matrices for the per-head softmax reductions
    # (summat_top pre-sliced in the wrapper so the kernel never slices the big one).
    summat_top = jnp.kron(jnp.ones((1, d_o), f32), eye_h)   # [H, d_o*H]
    summat = jnp.kron(jnp.ones((d_o, d_o), f32), eye_h)     # [d_o*H, d_o*H]

    weights = [
        rhs1.astype(act_dtype), b1, keep1,
        rhs2.astype(act_dtype), b2, keep2,
        rhs3.astype(act_dtype), b3,
        summat_top, summat,
    ]

    # ---- batch tiling / VMEM budget (generation-aware) ----
    vmem_cap = _vmem_capacity_bytes()
    # scoped limit <= half of physical VMEM: 32 MiB on v7x (64 MiB/TC), 64 MiB on v5e/v6e.
    vmem_limit = int(min(max(vmem_cap // 2, 32 * 1024 * 1024), 64 * 1024 * 1024))
    out_bytes = jnp.dtype(out_dtype).itemsize
    tb = _pick_tile_b(B, tile_b, in_pad, out_pad, out_bytes,
                      tile_budget=(vmem_limit * 3) // 5)
    Bp = _round_up(B, tb)

    # fused, lane-dense bf16 activation slab; zero-pad rows (batch) and lanes (features)
    qev = jnp.concatenate([query, edge, value], axis=1).astype(act_dtype)
    qev = jnp.pad(qev, ((0, Bp - B), (0, in_pad - in_width)))

    kernel = functools.partial(_mhea_kernel, H, d_o, da, de, out_pad)
    out = pl.pallas_call(
        kernel,
        grid_spec=pltpu.PrefetchScalarGridSpec(
            num_scalar_prefetch=0,
            grid=(Bp // tb,),
            in_specs=[pl.BlockSpec((tb, in_pad), lambda i: (i, 0))]
                     + [pl.BlockSpec(w.shape, lambda i: (0, 0)) for w in weights],
            out_specs=pl.BlockSpec((tb, out_pad), lambda i: (i, 0)),
        ),
        out_shape=jax.ShapeDtypeStruct((Bp, out_pad), out_dtype),
        compiler_params=pltpu.CompilerParams(
            dimension_semantics=("parallel",),
            vmem_limit_bytes=vmem_limit,
        ),
    )(qev, *weights)

    out = out[:B].astype(return_dtype)
    x = out[:, :da]
    edge_feature = out[:, da:da + de]
    prob = out[:, da + de:da + de + da].reshape(B, d_o, H)
    return x, edge_feature, prob


def init_params(key, num_heads, dim_node, dim_edge, dim_atten):
    d_n = dim_node // num_heads
    d_e = dim_edge // num_heads
    d_o = dim_atten // num_heads
    shapes = {
        # build_mlp([2*dim_node+dim_edge, dim_node+dim_edge, dim_edge])  ([in, out])
        "we1": (2 * dim_node + dim_edge, dim_node + dim_edge),
        "be1": (dim_node + dim_edge,),
        "we2": (dim_node + dim_edge, dim_edge),
        "be2": (dim_edge,),
        # proj_query / proj_edge / proj_value
        "wq": (dim_node, dim_node),
        "bq": (dim_node,),
        "wep": (dim_edge, dim_edge),
        "bep": (dim_edge,),
        "wv": (dim_node, dim_atten),
        "bv": (dim_atten,),
        # MLP([d_n+d_e, d_n+d_e, d_o]) Conv1d(k=1) weights stored [in_ch, out_ch]
        "A1": (d_n + d_e, d_n + d_e),
        "bc1": (d_n + d_e,),
        "A2": (d_n + d_e, d_o),
        "bc2": (d_o,),
    }
    params = {}
    keys = jax.random.split(key, len(shapes))
    for k, (name, shp) in zip(keys, sorted(shapes.items())):
        params[name] = 0.1 * jax.random.normal(k, shp, dtype=jnp.float32)
    return params


def reference(q, e, v, params, num_heads):
    """Plain-JAX mirror of the PyTorch forward (for verification)."""
    B = q.shape[0]
    d_n = params["wq"].shape[1] // num_heads
    d_e = params["wep"].shape[1] // num_heads
    with jax.default_matmul_precision("highest"):
        ef = jnp.concatenate([q, e, v], axis=1) @ params["we1"] + params["be1"]
        ef = jax.nn.relu(ef) @ params["we2"] + params["be2"]
        v_p = v @ params["wv"] + params["bv"]
        q_p = (q @ params["wq"] + params["bq"]).reshape(B, d_n, num_heads)
        e_p = (e @ params["wep"] + params["bep"]).reshape(B, d_e, num_heads)
        qe = jnp.concatenate([q_p, e_p], axis=1)          # [B, C, H]
        hid = jax.nn.relu(jnp.einsum("bch,co->boh", qe, params["A1"])
                          + params["bc1"][None, :, None])
        logits = (jnp.einsum("bch,co->boh", hid, params["A2"])
                  + params["bc2"][None, :, None])
        prob = jax.nn.softmax(logits, axis=1)             # [B, d_o, H]
        x = prob.reshape(B, -1) * v_p
    return x, ef, prob


if __name__ == "__main__":
    num_heads = 4
    dim_node, dim_edge, dim_atten = 32, 16, 32
    B = 50   # deliberately not tile-aligned: exercises row padding

    key = jax.random.PRNGKey(0)
    kq, ke, kv, kp = jax.random.split(key, 4)
    query = jax.random.normal(kq, (B, dim_node), dtype=jnp.float32)
    edge = jax.random.normal(ke, (B, dim_edge), dtype=jnp.float32)
    value = jax.random.normal(kv, (B, dim_node), dtype=jnp.float32)
    params = init_params(kp, num_heads, dim_node, dim_edge, dim_atten)

    x, edge_feature, prob = multi_headed_edge_attention(
        query, edge, value, params, num_heads=num_heads)
    jax.block_until_ready((x, edge_feature, prob))

    # The kernel ingests bf16 activations and bf16 weight matrices (MXU-rate path) and
    # stores a bf16 output slab; give the reference the same rounded inputs/weights and
    # allow ~2e-2 tolerance for the remaining bf16 inter-stage + output rounding.
    def _bf16(a):
        return a.astype(jnp.bfloat16).astype(jnp.float32)

    params_r = dict(params)
    for name in ("we1", "we2", "wq", "wep", "wv", "A1", "A2"):
        params_r[name] = _bf16(params[name])
    x_r, ef_r, prob_r = reference(_bf16(query), _bf16(edge), _bf16(value),
                                  params_r, num_heads)

    assert x.shape == (B, dim_atten)
    assert edge_feature.shape == (B, dim_edge)
    assert prob.shape == (B, dim_atten // num_heads, num_heads)
    assert jnp.allclose(x, x_r, atol=2e-2, rtol=2e-2)
    assert jnp.allclose(edge_feature, ef_r, atol=2e-2, rtol=2e-2)
    assert jnp.allclose(prob, prob_r, atol=2e-2, rtol=2e-2)

    print("KERNEL_OK")
</pallas_src>

<mosaic_0001>
module attributes {stable_mosaic.version = 11 : i64} {
  func.func @_mhea_kernel(%arg0: i32, %arg1: memref<56x128xbf16, #tpu.memory_space<vmem>>, %arg2: memref<128x128xbf16, #tpu.memory_space<vmem>>, %arg3: memref<1x128xf32, #tpu.memory_space<vmem>>, %arg4: memref<1x128xf32, #tpu.memory_space<vmem>>, %arg5: memref<128x64xbf16, #tpu.memory_space<vmem>>, %arg6: memref<1x64xf32, #tpu.memory_space<vmem>>, %arg7: memref<1x64xf32, #tpu.memory_space<vmem>>, %arg8: memref<64x32xbf16, #tpu.memory_space<vmem>>, %arg9: memref<1x32xf32, #tpu.memory_space<vmem>>, %arg10: memref<4x32xf32, #tpu.memory_space<vmem>>, %arg11: memref<32x32xf32, #tpu.memory_space<vmem>>, %arg12: memref<56x128xbf16, #tpu.memory_space<vmem>>) attributes {dimension_semantics = [#tpu.dimension_semantics<parallel>], iteration_bounds = array<i64: 1>, scalar_prefetch = 0 : i64, scratch_operands = 0 : i64, tpu.core_type = #tpu.core_type<tc>, window_params = [{transform_indices = @transform_0, window_bounds = array<i64: 56, 128>}, {pipeline_mode = #tpu.pipeline_mode<synchronous>, transform_indices = @transform_1, window_bounds = array<i64: 128, 128>}, {pipeline_mode = #tpu.pipeline_mode<synchronous>, transform_indices = @transform_2, window_bounds = array<i64: 1, 128>}, {pipeline_mode = #tpu.pipeline_mode<synchronous>, transform_indices = @transform_3, window_bounds = array<i64: 1, 128>}, {pipeline_mode = #tpu.pipeline_mode<synchronous>, transform_indices = @transform_4, window_bounds = array<i64: 128, 64>}, {pipeline_mode = #tpu.pipeline_mode<synchronous>, transform_indices = @transform_5, window_bounds = array<i64: 1, 64>}, {pipeline_mode = #tpu.pipeline_mode<synchronous>, transform_indices = @transform_6, window_bounds = array<i64: 1, 64>}, {pipeline_mode = #tpu.pipeline_mode<synchronous>, transform_indices = @transform_7, window_bounds = array<i64: 64, 32>}, {pipeline_mode = #tpu.pipeline_mode<synchronous>, transform_indices = @transform_8, window_bounds = array<i64: 1, 32>}, {pipeline_mode = #tpu.pipeline_mode<synchronous>, transform_indices = @transform_9, window_bounds = array<i64: 4, 32>}, {pipeline_mode = #tpu.pipeline_mode<synchronous>, transform_indices = @transform_10, window_bounds = array<i64: 32, 32>}, {transform_indices = @transform_11, window_bounds = array<i64: 56, 128>}]} {
    %c0 = arith.constant 0 : index
    %c0_0 = arith.constant 0 : index
    %0 = vector.load %arg1[%c0, %c0_0] : memref<56x128xbf16, #tpu.memory_space<vmem>>, vector<56x128xbf16>
    %c0_1 = arith.constant 0 : index
    %c0_2 = arith.constant 0 : index
    %1 = vector.load %arg2[%c0_1, %c0_2] : memref<128x128xbf16, #tpu.memory_space<vmem>>, vector<128x128xbf16>
    %cst = arith.constant dense<0.000000e+00> : vector<56x128xf32>
    %2 = tpu.matmul %0, %1, %cst {dimension_numbers = #tpu.dot_dimension_numbers<[1], [0], [0], [1], [0, 0, 1, 1], [], []>} : vector<56x128xbf16>, vector<128x128xbf16>, vector<56x128xf32> -> vector<56x128xf32>
    %c0_3 = arith.constant 0 : index
    %c0_4 = arith.constant 0 : index
    %3 = vector.load %arg3[%c0_3, %c0_4] : memref<1x128xf32, #tpu.memory_space<vmem>>, vector<1x128xf32>
    %4 = vector.broadcast %3 : vector<1x128xf32> to vector<56x128xf32>
    %5 = arith.addf %2, %4 : vector<56x128xf32>
    %c0_5 = arith.constant 0 : index
    %c0_6 = arith.constant 0 : index
    %6 = vector.load %arg4[%c0_5, %c0_6] : memref<1x128xf32, #tpu.memory_space<vmem>>, vector<1x128xf32>
    %7 = vector.broadcast %6 : vector<1x128xf32> to vector<56x128xf32>
    %8 = arith.mulf %5, %7 : vector<56x128xf32>
    %9 = arith.maximumf %5, %8 : vector<56x128xf32>
    %10 = arith.truncf %9 : vector<56x128xf32> to vector<56x128xbf16>
    %c0_7 = arith.constant 0 : index
    %c0_8 = arith.constant 0 : index
    %11 = vector.load %arg5[%c0_7, %c0_8] : memref<128x64xbf16, #tpu.memory_space<vmem>>, vector<128x64xbf16>
    %cst_9 = arith.constant dense<0.000000e+00> : vector<56x64xf32>
    %12 = tpu.matmul %10, %11, %cst_9 {dimension_numbers = #tpu.dot_dimension_numbers<[1], [0], [0], [1], [0, 0, 1, 1], [], []>} : vector<56x128xbf16>, vector<128x64xbf16>, vector<56x64xf32> -> vector<56x64xf32>
    %c0_10 = arith.constant 0 : index
    %c0_11 = arith.constant 0 : index
    %13 = vector.load %arg6[%c0_10, %c0_11] : memref<1x64xf32, #tpu.memory_space<vmem>>, vector<1x64xf32>
    %14 = vector.broadcast %13 : vector<1x64xf32> to vector<56x64xf32>
    %15 = arith.addf %12, %14 : vector<56x64xf32>
    %c0_12 = arith.constant 0 : index
    %c0_13 = arith.constant 0 : index
    %16 = vector.load %arg7[%c0_12, %c0_13] : memref<1x64xf32, #tpu.memory_space<vmem>>, vector<1x64xf32>
    %17 = vector.broadcast %16 : vector<1x64xf32> to vector<56x64xf32>
    %18 = arith.mulf %15, %17 : vector<56x64xf32>
    %19 = arith.maximumf %15, %18 : vector<56x64xf32>
    %20 = arith.truncf %19 : vector<56x64xf32> to vector<56x64xbf16>
    %c0_14 = arith.constant 0 : index
    %c0_15 = arith.constant 0 : index
    %21 = vector.load %arg8[%c0_14, %c0_15] : memref<64x32xbf16, #tpu.memory_space<vmem>>, vector<64x32xbf16>
    %cst_16 = arith.constant dense<0.000000e+00> : vector<56x32xf32>
    %22 = tpu.matmul %20, %21, %cst_16 {dimension_numbers = #tpu.dot_dimension_numbers<[1], [0], [0], [1], [0, 0, 1, 1], [], []>} : vector<56x64xbf16>, vector<64x32xbf16>, vector<56x32xf32> -> vector<56x32xf32>
    %c0_17 = arith.constant 0 : index
    %c0_18 = arith.constant 0 : index
    %23 = vector.load %arg9[%c0_17, %c0_18] : memref<1x32xf32, #tpu.memory_space<vmem>>, vector<1x32xf32>
    %24 = vector.broadcast %23 : vector<1x32xf32> to vector<56x32xf32>
    %25 = arith.addf %22, %24 : vector<56x32xf32>
    %26 = vector.extract_strided_slice %25 {offsets = [0, 0], sizes = [56, 16], strides = [1, 1]} : vector<56x32xf32> to vector<56x16xf32>
    %27 = vector.extract_strided_slice %25 {offsets = [0, 16], sizes = [56, 16], strides = [1, 1]} : vector<56x32xf32> to vector<56x16xf32>
    %28 = arith.maximumf %26, %27 : vector<56x16xf32>
    %29 = vector.extract_strided_slice %28 {offsets = [0, 0], sizes = [56, 8], strides = [1, 1]} : vector<56x16xf32> to vector<56x8xf32>
    %30 = vector.extract_strided_slice %28 {offsets = [0, 8], sizes = [56, 8], strides = [1, 1]} : vector<56x16xf32> to vector<56x8xf32>
    %31 = arith.maximumf %29, %30 : vector<56x8xf32>
    %32 = vector.extract_strided_slice %31 {offsets = [0, 0], sizes = [56, 4], strides = [1, 1]} : vector<56x8xf32> to vector<56x4xf32>
    %33 = vector.extract_strided_slice %31 {offsets = [0, 4], sizes = [56, 4], strides = [1, 1]} : vector<56x8xf32> to vector<56x4xf32>
    %34 = arith.maximumf %32, %33 : vector<56x4xf32>
    %c0_19 = arith.constant 0 : index
    %c0_20 = arith.constant 0 : index
    %35 = vector.load %arg10[%c0_19, %c0_20] : memref<4x32xf32, #tpu.memory_space<vmem>>, vector<4x32xf32>
    %cst_21 = arith.constant dense<0.000000e+00> : vector<56x32xf32>
    %36 = tpu.matmul %34, %35, %cst_21 {dimension_numbers = #tpu.dot_dimension_numbers<[1], [0], [0], [1], [0, 0, 1, 1], [], []>} : vector<56x4xf32>, vector<4x32xf32>, vector<56x32xf32> -> vector<56x32xf32>
    %37 = arith.subf %25, %36 : vector<56x32xf32>
    %38 = math.exp %37 : vector<56x32xf32>
    %c0_22 = arith.constant 0 : index
    %c0_23 = arith.constant 0 : index
    %39 = vector.load %arg11[%c0_22, %c0_23] : memref<32x32xf32, #tpu.memory_space<vmem>>, vector<32x32xf32>
    %cst_24 = arith.constant dense<0.000000e+00> : vector<56x32xf32>
    %40 = tpu.matmul %38, %39, %cst_24 {dimension_numbers = #tpu.dot_dimension_numbers<[1], [0], [0], [1], [0, 0, 1, 1], [], []>} : vector<56x32xf32>, vector<32x32xf32>, vector<56x32xf32> -> vector<56x32xf32>
    %41 = tpu.reciprocal %40 {approx = true} : vector<56x32xf32> -> vector<56x32xf32>
    %42 = arith.mulf %40, %41 : vector<56x32xf32>
    %cst_25 = arith.constant 2.000000e+00 : f32
    %43 = vector.broadcast %cst_25 : f32 to vector<56x32xf32>
    %44 = arith.subf %43, %42 : vector<56x32xf32>
    %45 = arith.mulf %41, %44 : vector<56x32xf32>
    %46 = arith.mulf %38, %45 : vector<56x32xf32>
    %47 = vector.extract_strided_slice %9 {offsets = [0, 0], sizes = [56, 32], strides = [1, 1]} : vector<56x128xf32> to vector<56x32xf32>
    %48 = arith.mulf %46, %47 : vector<56x32xf32>
    %49 = vector.extract_strided_slice %19 {offsets = [0, 0], sizes = [56, 16], strides = [1, 1]} : vector<56x64xf32> to vector<56x16xf32>
    %cst_26 = arith.constant 0.000000e+00 : f32
    %50 = vector.broadcast %cst_26 : f32 to vector<56x48xf32>
    %51 = tpu.concatenate %48, %49, %46, %50 in 1 : vector<56x32xf32>, vector<56x16xf32>, vector<56x32xf32>, vector<56x48xf32> -> vector<56x128xf32>
    %52 = arith.truncf %51 : vector<56x128xf32> to vector<56x128xbf16>
    %c0_27 = arith.constant 0 : index
    %c0_28 = arith.constant 0 : index
    %53 = vector.load %arg12[%c0_27, %c0_28] : memref<56x128xbf16, #tpu.memory_space<vmem>>, vector<56x128xbf16>
    tpu.vector_store %arg12[%c0_27, %c0_28], %52 {strides = array<i32>} : memref<56x128xbf16, #tpu.memory_space<vmem>>, vector<56x128xbf16>,
    return
  }
  func.func @transform_0(%arg0: i32) -> (i32, i32) {
    %c0_i32 = arith.constant 0 : i32
    %c0_i32_0 = arith.constant 0 : i32
    return %arg0, %c0_i32 : i32, i32
  }
  func.func @transform_1(%arg0: i32) -> (i32, i32) {
    %c0_i32 = arith.constant 0 : i32
    %c0_i32_0 = arith.constant 0 : i32
    %c0_i32_1 = arith.constant 0 : i32
    return %c0_i32, %c0_i32_0 : i32, i32
  }
  func.func @transform_2(%arg0: i32) -> (i32, i32) {
    %c0_i32 = arith.constant 0 : i32
    %c0_i32_0 = arith.constant 0 : i32
    %c0_i32_1 = arith.constant 0 : i32
    return %c0_i32, %c0_i32_0 : i32, i32
  }
  func.func @transform_3(%arg0: i32) -> (i32, i32) {
    %c0_i32 = arith.constant 0 : i32
    %c0_i32_0 = arith.constant 0 : i32
    %c0_i32_1 = arith.constant 0 : i32
    return %c0_i32, %c0_i32_0 : i32, i32
  }
  func.func @transform_4(%arg0: i32) -> (i32, i32) {
    %c0_i32 = arith.constant 0 : i32
    %c0_i32_0 = arith.constant 0 : i32
    %c0_i32_1 = arith.constant 0 : i32
    return %c0_i32, %c0_i32_0 : i32, i32
  }
  func.func @transform_5(%arg0: i32) -> (i32, i32) {
    %c0_i32 = arith.constant 0 : i32
    %c0_i32_0 = arith.constant 0 : i32
    %c0_i32_1 = arith.constant 0 : i32
    return %c0_i32, %c0_i32_0 : i32, i32
  }
  func.func @transform_6(%arg0: i32) -> (i32, i32) {
    %c0_i32 = arith.constant 0 : i32
    %c0_i32_0 = arith.constant 0 : i32
    %c0_i32_1 = arith.constant 0 : i32
    return %c0_i32, %c0_i32_0 : i32, i32
  }
  func.func @transform_7(%arg0: i32) -> (i32, i32) {
    %c0_i32 = arith.constant 0 : i32
    %c0_i32_0 = arith.constant 0 : i32
    %c0_i32_1 = arith.constant 0 : i32
    return %c0_i32, %c0_i32_0 : i32, i32
  }
  func.func @transform_8(%arg0: i32) -> (i32, i32) {
    %c0_i32 = arith.constant 0 : i32
    %c0_i32_0 = arith.constant 0 : i32
    %c0_i32_1 = arith.constant 0 : i32
    return %c0_i32, %c0_i32_0 : i32, i32
  }
  func.func @transform_9(%arg0: i32) -> (i32, i32) {
    %c0_i32 = arith.constant 0 : i32
    %c0_i32_0 = arith.constant 0 : i32
    %c0_i32_1 = arith.constant 0 : i32
    return %c0_i32, %c0_i32_0 : i32, i32
  }
  func.func @transform_10(%arg0: i32) -> (i32, i32) {
    %c0_i32 = arith.constant 0 : i32
    %c0_i32_0 = arith.constant 0 : i32
    %c0_i32_1 = arith.constant 0 : i32
    return %c0_i32, %c0_i32_0 : i32, i32
  }
  func.func @transform_11(%arg0: i32) -> (i32, i32) {
    %c0_i32 = arith.constant 0 : i32
    %c0_i32_0 = arith.constant 0 : i32
    return %arg0, %c0_i32 : i32, i32
  }
}

</mosaic_0001>

<bundles_post_ra>
// kernel: tpu_custom_call.1
= control target key start
LH: loop header
LB: loop body
LE: loop exit
PB: predicated region body
PF: predicated region fallthrough
CT: control target
= control target key end

     0   :  { %16 = vsyncpa [#allocation3], 0  ;;  %s1857_s0 = inlined_call_operand.vmem [shape: bf16[56,128], index: 0, kind: input, shape index: {}]   ;;  %s1858_s1 = inlined_call_operand.vmem [shape: bf16[128,128], index: 1, kind: input, shape index: {}]   ;;  %s1859_s2 = inlined_call_operand.vmem [shape: f32[1,128], index: 2, kind: input, shape index: {}]   ;;  %s1860_s3 = inlined_call_operand.vmem [shape: f32[1,128], index: 3, kind: input, shape index: {}]   ;;  %s1861_s4 = inlined_call_operand.vmem [shape: bf16[128,64], index: 4, kind: input, shape index: {}]   ;;  %s1862_s5 = inlined_call_operand.hbm [shape: f32[1,64], index: 5, kind: input, shape index: {}]   ;;  %s1863_s6 = inlined_call_operand.vmem [shape: f32[1,64], index: 6, kind: input, shape index: {}]   ;;  %s1864_s7 = inlined_call_operand.vmem [shape: bf16[64,32], index: 7, kind: input, shape index: {}]   ;;  %s1865_s8 = inlined_call_operand.vmem [shape: f32[1,32], index: 8, kind: input, shape index: {}]   ;;  %s1866_s9 = inlined_call_operand.vmem [shape: f32[4,32], index: 9, kind: input, shape index: {}]   ;;  %s1867_s10 = inlined_call_operand.vmem [shape: f32[32,32], index: 10, kind: input, shape index: {}]   ;;  %s1868_s11 = inlined_call_operand.hbm [shape: bf16[56,128], index: 11, kind: output, shape index: {}]  }
   0x1   :  { %17 = vsyncpa [#allocation4], 0  ;;  %s1472_s17 = smov [#allocation2]   ;;  %s1424_s21 = scalar_lea.hbm %s1862_s5, 16 }
   0x2   :  { %s34_s18 = sshll.u32 %s1472_s17, 4  ;;  %p1425_p0 = scmp.ne.s32.totalorder %s1862_s5, %s1424_s21  ;;  %s35_s18 = int_to_ptr.vmem [resolvable:$true] %s34_s18 }
   0x3   :  { %p1428_p1 = scmp.lt.u32.totalorder %s1424_s21, %s1862_s5 }
   0x5   :  { %p1430_p2 = pnand %p1428_p1, %p1425_p0 }
   0x7   :  { %1433 = shalt.err (!%p1430_p2)
}
   0x8   :  { %s1434_s26 = scalar_lea.vmem %s35_s18, 16  ;;  %s1438_s27 = scalar_lea.vmem %s35_s18, 32 }
   0x9   :  { %p1435_p3 = scmp.ne.s32.totalorder %s35_s18, %s1434_s26  ;;  %p1439_p4 = scmp.lt.s32.totalorder %s35_s18, %s35_s18 }
   0xa   :  { %p1440_p5 = scmp.lt.s32.totalorder %s1438_s27, %s1434_s26 }
   0xc   :  { %p1441_p6 = por %p1440_p5, %p1439_p4 }
   0xe   :  { %p1442_p7 = pnand %p1441_p6, %p1435_p3 }
  0x10   :  { %1445 = shalt.err (!%p1442_p7)
}
  0x11   :  { %37 = dma.hbm_to_vmem [thread:$0]  %s1862_s5, 16, %s35_s18, [#allocation3]  }
  0x12   :  { %1468 = dma.done.wait [#allocation3], 16  }
  0x13   :  { %1469 = vsyncadd [#allocation3], 4294967280  ;;  %v1372_v0 = vld [vmem:[%s1858_s1] sm:$0xff]   ;;  %v1373_v1 = vld [vmem:[%s1858_s1 + $0x8] sm:$0xff]   ;;  %vm440_vm0 = vcmask 523264   ;;  %s1473_s19 = smov 112  }
  0x14   :  { %1200 = vmatprep.subr.bf16.mxu0 %v1372_v0  ;;  %v1374_v2 = vld [vmem:[%s1858_s1 + $0x10] sm:$0xff]   ;;  %v1375_v3 = vld [vmem:[%s1858_s1 + $0x18] sm:$0xff]   ;;  %v1380_v4 = vld [vmem:[%s1857_s0] sm:$0xff]   ;;  %vm645_vm1 = vcmask 1043456   ;;  %vm1476_vm2 = vmmov 0   ;;  %vm623_vm3 = vcmask 31744  }
  0x15   :  { %1201 = vmatpush3.bf16.msra.mxu0 %v1372_v0  ;;  %1216 = vmatprep.mubr.bf16.mxu0 %v1380_v4  ;;  %v1376_v5 = vld [vmem:[%s1858_s1 + $0x20] sm:$0xff]   ;;  %v1385_v7 = vld [vmem:[%s1861_s4 + $0x8] sm:$0xff]   ;;  %v1386_v9 = vld [vmem:[%s1861_s4 + $0x10] sm:$0xff]   ;;  %vm774_vm4 = vcmask 261120   ;;  %vm1001_vm5 = vcmask 392192   ;;  %vm1009_vm6 = vcmask 654336  }
  0x16   :  { %1202 = vmatprep.subr.bf16.mxu0 %v1373_v1  ;;  %v1384_v6 = vld [vmem:[%s1861_s4] sm:$0xff]   ;;  %v1377_v8 = vld [vmem:[%s1858_s1 + $0x28] sm:$0xff]   ;;  %v1378_v10 = vld [vmem:[%s1858_s1 + $0x30] sm:$0xff]   ;;  %s1481_s29 = smov [#allocation5]  }
  0x17   :  { %1224 = vmatprep.subr.bf16.mxu1 %v1384_v6  ;;  %v1387_v11 = vld [vmem:[%s1861_s4 + $0x18] sm:$0xff]   ;;  %v1388_v13 = vld [vmem:[%s1861_s4 + $0x20] sm:$0xff]   ;;  %v1381_v14 = vld [vmem:[%s1857_s0 + $0x8] sm:$0xff]   ;;  %s1058_s30 = sshll.u32 %s1481_s29, 4  ;;  %s1059_s30 = int_to_ptr.vmem [resolvable:$true] %s1058_s30 }
  0x18   :  { %1225 = vmatpush3.bf16.msra.mxu1 %v1384_v6  ;;  %v1379_v12 = vld [vmem:[%s1858_s1 + $0x38] sm:$0xff]   ;;  %v1382_v15 = vld [vmem:[%s1857_s0 + $0x10] sm:$0xff]   ;;  %v1389_v17 = vld [vmem:[%s1861_s4 + $0x28] sm:$0xff]   ;;  %s1478_s1 = smov 32   ;;  %s1446_s12 = scalar_lea.vmem %s1059_s30, 448 }
  0x19   :  { %1203 = vmatpush3.bf16.msra.mxu0 %v1373_v1  ;;  %1226 = vmatprep.subr.bf16.mxu1 %v1385_v7  ;;  %v1383_v16 = vld [vmem:[%s1857_s0 + $0x18] ss:$0 sps:$4 sm:$0xff]   ;;  %v1390_v18 = vld [vmem:[%s1861_s4 + $0x30] sm:$0xff]   ;;  %v1392_v20 = vld [vmem:[%s1864_s7] sm:$0xff]   ;;  %p1447_p8 = scmp.ne.s32.totalorder %s1059_s30, %s1446_s12  ;;  %p1451_p9 = scmp.lt.s32.totalorder %s1059_s30, %s1059_s30 }
  0x1a   :  { %1204 = vmatprep.subr.bf16.mxu0 %v1374_v2  ;;  %v1391_v19 = vld [vmem:[%s1861_s4 + $0x38] sm:$0xff]   ;;  %v1070_v21 = vld [vmem:[%s1859_s2] ss:$0 sm:$0xff]  ;;  %v1393_v56 = vld [vmem:[%s1864_s7 + $0x8] sm:$0xff]   ;;  %p1452_p10 = scmp.lt.s32.totalorder %s1446_s12, %s1446_s12 }
  0x1b   :  { %v1083_v24 = vld [vmem:[%s1860_s3] ss:$0 sm:$0xff]  ;;  %v1394_v57 = vld [vmem:[%s1864_s7 + $0x10] sm:$0xff]   ;;  %v1395_v58 = vld [vmem:[%s1864_s7 + $0x18] sm:$0xff]  }
  0x1c   :  { %1227 = vmatpush3.bf16.msra.mxu1 %v1385_v7  ;;  %v1084_v59 = vld [vmem:[#allocation2] ss:$0 sm:$0xff]  ;;  %p1453_p11 = por %p1452_p10, %p1451_p9 }
  0x1d   :  { %1205 = vmatpush3.bf16.msra.mxu0 %v1374_v2  ;;  %1228 = vmatprep.subr.bf16.mxu1 %v1386_v9  ;;  %v1093_v61 = vld [vmem:[%s1863_s6] ss:$0 sm:$0xff] }
  0x1e   :  { %1206 = vmatprep.subr.bf16.mxu0 %v1375_v3  ;;  %p1454_p12 = pnand %p1453_p11, %p1447_p8 }
  0x20   :  { %1229 = vmatpush3.bf16.msra.mxu1 %v1386_v9 }
  0x21   :  { %1207 = vmatpush3.bf16.msra.mxu0 %v1375_v3  ;;  %1230 = vmatprep.subr.bf16.mxu1 %v1387_v11 }
  0x22   :  { %1208 = vmatprep.subr.bf16.mxu0 %v1376_v5 }
  0x24   :  { %1231 = vmatpush3.bf16.msra.mxu1 %v1387_v11 }
  0x25   :  { %1209 = vmatpush3.bf16.msra.mxu0 %v1376_v5  ;;  %1232 = vmatprep.subr.bf16.mxu1 %v1388_v13 }
  0x26   :  { %1210 = vmatprep.subr.bf16.mxu0 %v1377_v8 }
  0x28   :  { %1233 = vmatpush3.bf16.msra.mxu1 %v1388_v13 }
  0x29   :  { %1211 = vmatpush3.bf16.msra.mxu0 %v1377_v8  ;;  %1234 = vmatprep.subr.bf16.mxu1 %v1389_v17 }
  0x2a   :  { %1212 = vmatprep.subr.bf16.mxu0 %v1378_v10 }
  0x2c   :  { %1235 = vmatpush3.bf16.msra.mxu1 %v1389_v17 }
  0x2d   :  { %1213 = vmatpush3.bf16.msra.mxu0 %v1378_v10  ;;  %1236 = vmatprep.subr.bf16.mxu1 %v1390_v18 }
  0x2e   :  { %1214 = vmatprep.subr.bf16.mxu0 %v1379_v12 }
  0x30   :  { %1237 = vmatpush3.bf16.msra.mxu1 %v1390_v18 }
  0x31   :  { %1215 = vmatpush3.bf16.msra.mxu0 %v1379_v12  ;;  %1238 = vmatprep.subr.bf16.mxu1 %v1391_v19 }
  0x32   :  { %1248 = vmatprep.subr.bf16.mxu0 %v1392_v20 }
  0x34   :  { %1217 = vmatmul.mubr.bf16.vlgmr.msra.gmra.mrb[0].mxu0 %v1381_v14  ;;  %1239 = vmatpush3.bf16.msra.mxu1 %v1391_v19 }
  0x35   :  { %1220 = vmatprep.mubr.bf16.mxu0 %v1382_v15  ;;  %1322 = vmatprep.subr.bf16.mxu1 %v1392_v20 }
  0x36   :  { %1249 = vmatpush3.bf16.msra.mxu0 %v1392_v20 }
  0x37   :  { %1250 = vmatprep.subr.bf16.mxu0 %v1393_v56 }
  0x3a   :  { %1251 = vmatpush3.bf16.msra.mxu0 %v1393_v56 }
  0x3b   :  { %1252 = vmatprep.subr.bf16.mxu0 %v1394_v57 }
  0x3c   :  { %1221 = vmatmul.mubr.bf16.gmra.mrb[4].mxu0 %v1383_v16 }
  0x3e   :  { %1253 = vmatpush3.bf16.msra.mxu0 %v1394_v57 }
  0x3f   :  { %1254 = vmatprep.subr.bf16.mxu0 %v1395_v58 }
  0x42   :  { %1255 = vmatpush3.bf16.msra.mxu0 %v1395_v58 }
 0x107   :  { %v1218_v22 = vpop.f32.mrb[0].mxu0 }
 0x108   :  { %v195_v23 = vadd.f32 %v1218_v22, %v1070_v21  ;;  %v186_v25 = vpop.f32.mrb[1].mxu0 }
 0x109   :  { %v187_v26 = vadd.f32 %v1070_v21, %v186_v25  ;;  %v1219_v27 = vpop.f32.mrb[2].mxu0 }
 0x10a   :  { %v198_v28 = vadd.f32 %v1219_v27, %v1070_v21  ;;  %v189_v29 = vpop.f32.mrb[3].mxu0  ;;  %v225_v32 = vmul.f32 %v1083_v24, %v195_v23 }
 0x10b   :  { %v223_v30 = vmul.f32 %v1083_v24, %v187_v26  ;;  %v190_v31 = vadd.f32 %v1070_v21, %v189_v29 }
 0x10c   :  { %v226_v33 = vmul.f32 %v1083_v24, %v198_v28  ;;  %v1631_v39 = vmax.f32 %v195_v23, %v225_v32 }
 0x10d   :  { %v224_v34 = vmul.f32 %v1083_v24, %v190_v31  ;;  %v1627_v37 = vmax.f32 %v187_v26, %v223_v30 }
 0x10e   :  { %v1625_v35 = vmax.f32 %v198_v28, %v226_v33  ;;  %v1094_v33 = vld [vmem:[%s1865_s8] ss:$0 sm:$0xff]  ;;  %s1474_s8 = smov 120  }
 0x10f   :  { %v1222_v36 = vpop.f32.mrb[4].mxu0  ;;  %v1629_v38 = vmax.f32 %v190_v31, %v224_v34 }
 0x110   :  { %v211_v40 = vadd.f32 %v1222_v36, %v1070_v21  ;;  %v202_v41 = vpop.f32.mrb[5].mxu0  ;;  %v238_v47 = vpack.c.bf16 %v1625_v35, %v1631_v39 }
 0x111   :  { %v203_v42 = vadd.f32 %v1070_v21, %v202_v41  ;;  %v1223_v43 = vpop.f32.mrb[6].mxu0  ;;  %v237_v44 = vpack.c.bf16 %v1629_v38, %v1627_v37 }
 0x112   :  { %v229_v45 = vmul.f32 %v1083_v24, %v211_v40  ;;  %v205_v46 = vpop.f32.mrb[7].mxu0 }
 0x113   :  { %v227_v48 = vmul.f32 %v1083_v24, %v203_v42  ;;  %v206_v49 = vadd.f32 %v1070_v21, %v205_v46  ;;  %1240 = vmatprep.mubr.bf16.mxu1 %v237_v44 }
 0x114   :  { %v1637_v50 = vmax.f32 %v211_v40, %v229_v45  ;;  %1241 = vmatmul.mubr.bf16.vlgmr.msra.gmra.mrb[0].mxu1 %v238_v47 }
 0x115   :  { %v1639_v51 = vmax.f32 %v203_v42, %v227_v48  ;;  %v228_v52 = vmul.f32 %v1083_v24, %v206_v49  ;;  %1326 = vmatpush3.bf16.msra.mxu1 %v1392_v20 }
 0x116   :  { %v240_v54 = vpack.c.bf16 %v1637_v50, %v1637_v50  ;;  %1323 = vmatprep.subr.bf16.mxu1 %v1393_v56 }
 0x117   :  { %v1641_v53 = vmax.f32 %v206_v49, %v228_v52 }
 0x119   :  { %v239_v55 = vpack.c.bf16 %v1641_v53, %v1639_v51  ;;  %1327 = vmatpush3.bf16.msra.mxu1 %v1393_v56 }
 0x11a   :  { %1324 = vmatprep.subr.bf16.mxu1 %v1394_v57 }
 0x11b   :  { %1244 = vmatprep.mubr.bf16.mxu1 %v239_v55 }
 0x11c   :  { %1245 = vmatmul.mubr.bf16.gmra.mrb[4].mxu1 %v240_v54 }
 0x11d   :  { %1328 = vmatpush3.bf16.msra.mxu1 %v1394_v57 }
 0x11e   :  { %1325 = vmatprep.subr.bf16.mxu1 %v1395_v58 }
 0x121   :  { %1329 = vmatpush3.bf16.msra.mxu1 %v1395_v58 }
 0x1e7   :  { %v1242_v60 = vpop.f32.mrb[0].mxu1 }
 0x1e8   :  { %v355_v62 = vadd.f32 %v1242_v60, %v1084_v59  ;;  %v346_v63 = vpop.f32.mrb[1].mxu1 }
 0x1e9   :  { %v347_v0 = vadd.f32 %v1084_v59, %v346_v63  ;;  %v1243_v1 = vpop.f32.mrb[2].mxu1 }
 0x1ea   :  { %v385_v2 = vmul.f32 %v1093_v61, %v355_v62  ;;  %v358_v3 = vadd.f32 %v1243_v1, %v1084_v59  ;;  %v349_v4 = vpop.f32.mrb[3].mxu1 }
 0x1eb   :  { %v383_v5 = vmul.f32 %v1093_v61, %v347_v0  ;;  %v350_v6 = vadd.f32 %v1084_v59, %v349_v4  ;;  %v622_v4 = vld [vmem:[%s1866_s9] sm:$0xf]  ;;  %s1477_s9 = smov 124  }
 0x1ec   :  { %v386_v7 = vmul.f32 %v1093_v61, %v358_v3  ;;  %v1659_v9 = vmax.f32 %v355_v62, %v385_v2 }
 0x1ed   :  { %v384_v8 = vmul.f32 %v1093_v61, %v350_v6  ;;  %v1663_v11 = vmax.f32 %v347_v0, %v383_v5 }
 0x1ee   :  { %v1661_v10 = vmax.f32 %v358_v3, %v386_v7  ;;  %v1475_v7 = vmov 0.0  }
 0x1ef   :  { %v1665_v12 = vmax.f32 %v350_v6, %v384_v8  ;;  %v1246_v13 = vpop.f32.mrb[4].mxu1  ;;  %1264 = vmatprep.subr.mxu1 %v1475_v7 }
 0x1f0   :  { %v398_v14 = vpack.c.bf16 %v1661_v10, %v1659_v9  ;;  %v371_v15 = vadd.f32 %v1246_v13, %v1084_v59  ;;  %v362_v16 = vpop.f32.mrb[5].mxu1  ;;  %v1347_v17 = vpack.i.bf16 %v1661_v10, %v1659_v9 }
 0x1f1   :  { %v397_v18 = vpack.c.bf16 %v1665_v12, %v1663_v11  ;;  %v363_v19 = vadd.f32 %v1084_v59, %v362_v16  ;;  %v1247_v20 = vpop.f32.mrb[6].mxu1  ;;  %v1342_v21 = vpack.i.bf16 %v1665_v12, %v1663_v11 }
 0x1f2   :  { %v389_v22 = vmul.f32 %v1093_v61, %v371_v15  ;;  %v365_v23 = vpop.f32.mrb[7].mxu1 }
 0x1f3   :  { %v387_v24 = vmul.f32 %v1093_v61, %v363_v19  ;;  %v366_v25 = vadd.f32 %v1084_v59, %v365_v23  ;;  %1256 = vmatprep.mubr.msk.bf16.mxu0 %vm440_vm0, %v397_v18 }
 0x1f4   :  { %1257 = vmatmul.mubr.msk.bf16.vlgmr.msra.gmra.mrb[8].mxu0 %vm440_vm0, %v398_v14  ;;  %v1677_v27 = vmax.f32 %v371_v15, %v389_v22 }
 0x1f5   :  { %v388_v26 = vmul.f32 %v1093_v61, %v366_v25  ;;  %v1679_v28 = vmax.f32 %v363_v19, %v387_v24  ;;  %1295 = vmatprep.mubr.msk.f32.mxu0 %vm1476_vm2, %v1475_v7 }
 0x1f6   :  { %v400_v32 = vpack.c.bf16 %v1677_v27, %v1677_v27 }
 0x1f7   :  { %v1681_v29 = vmax.f32 %v366_v25, %v388_v26 }
 0x1f9   :  { %v399_v30 = vpack.c.bf16 %v1681_v29, %v1679_v28  ;;  %v1352_v31 = vpack.i.bf16 %v1681_v29, %v1679_v28 }
 0x1fb   :  { %1260 = vmatprep.mubr.msk.bf16.mxu1 %vm440_vm0, %v399_v30 }
 0x1fc   :  { %1261 = vmatmul.mubr.msk.bf16.vlgmr.msra.gmra.mrb[8].mxu1 %vm440_vm0, %v400_v32 }
 0x1fd   :  { %1265 = vmatpush3.msk.msra.mxu1 %vm645_vm1, %v622_v4  ;;  %1266 = vmatprep.mubr.msk.f32.mxu1 %vm1476_vm2, %v1475_v7 }
 0x2c7   :  { %v1258_v34 = vpop.f32.mrb[8].mxu0 }
 0x2c8   :  { %v1694_v36 = vadd.f32 %v1258_v34, %v1094_v33  ;;  %v487_v40 = vpop.f32.mrb[9].mxu0 }
 0x2c9   :  { %v1696_v41 = vadd.f32 %v1094_v33, %v487_v40  ;;  %v1259_v42 = vpop.f32.mrb[10].mxu0 }
 0x2ca   :  { %528 = vrot.lane.b32.xlu1 %v1694_v36, %s1473_s19  ;;  %v490_v43 = vpop.f32.mrb[11].mxu0  ;;  %v1700_v44 = vadd.f32 %v1259_v42, %v1094_v33  ;;  %v770_v42 = vld [vmem:[%s1867_s10] sm:$0xff] }
 0x2cb   :  { %524 = vrot.lane.b32.xlu0 %v1696_v41, %s1473_s19  ;;  %v1702_v45 = vadd.f32 %v1094_v33, %v490_v43  ;;  %v771_v43 = vld [vmem:[%s1867_s10 + $0x8] sm:$0xff] }
 0x2ce   :  { %530 = vrot.lane.b32.xlu1 %v1700_v44, %s1473_s19 }
 0x2cf   :  { %v1262_v46 = vpop.f32.mrb[8].mxu1  ;;  %526 = vrot.lane.b32.xlu0 %v1702_v45, %s1473_s19 }
 0x2d0   :  { %v503_v47 = vpop.f32.mrb[9].mxu1  ;;  %v1711_v55 = vadd.f32 %v1262_v46, %v1094_v33  ;;  %v1317_v46 = vpack.c.bf16 %v771_v43, %v770_v42 }
 0x2d1   :  { %v1706_v48 = vadd.f32 %v1094_v33, %v503_v47  ;;  %v1263_v49 = vpop.f32.mrb[10].mxu1  ;;  %v1479_v47 = vmov 0.0|0.0  }
 0x2d2   :  { %v506_v52 = vpop.f32.mrb[11].mxu1  ;;  %1316 = vmatprep.subr.bf16.mxu0 %v1479_v47  ;;  %v772_v49 = vld [vmem:[%s1867_s10 + $0x10] sm:$0xff] }
 0x2d3   :  { %v1708_v54 = vadd.f32 %v1094_v33, %v506_v52  ;;  %532 = vrot.lane.b32.xlu0 %v1706_v48, %s1473_s19  ;;  %1318 = vmatpush3.bf16.msra.mxu0 %v1317_v46  ;;  %v773_v52 = vld [vmem:[%s1867_s10 + $0x18] sm:$0xff]  ;;  %s1480_s10 = smov 48  }
 0x2d4   :  { %1319 = vmatprep.subr.bf16.mxu0 %v1479_v47 }
 0x2d5   :  { %534 = vrot.lane.b32.xlu1 %v1708_v54, %s1473_s19 }
 0x2d7   :  { %536 = vrot.lane.b32.xlu0 %v1711_v55, %s1473_s19 }
 0x33c   :  { %v529_v56 = vpop.permute.xlu1 %528 }
 0x33d   :  { %v525_v57 = vpop.permute.xlu0 %524  ;;  %v547_v60 = vmax.f32 %v1694_v36, %v529_v56  ;;  %v1320_v56 = vpack.c.bf16 %v773_v52, %v772_v49 }
 0x33e   :  { %v545_v58 = vmax.f32 %v1696_v41, %v525_v57 }
 0x33f   :  { %1321 = vmatpush3.bf16.msra.mxu0 %v1320_v56 }
 0x340   :  { %559 = vrot.lane.b32.xlu1 %v545_v58, %s1474_s8  ;;  %v531_v62 = vpop.permute.xlu1 %530 }
 0x341   :  { %v527_v59 = vpop.permute.xlu0 %526  ;;  %v548_v0 = vmax.f32 %v1700_v44, %v531_v62 }
 0x342   :  { %v546_v61 = vmax.f32 %v1702_v45, %v527_v59 }
 0x344   :  { %563 = vrot.lane.b32.xlu1 %v547_v60, %s1474_s8  ;;  %561 = vrot.lane.b32.xlu0 %v546_v61, %s1474_s8 }
 0x345   :  { %v533_v63 = vpop.permute.xlu0 %532 }
 0x346   :  { %v549_v1 = vmax.f32 %v1706_v48, %v533_v63 }
 0x347   :  { %v535_v2 = vpop.permute.xlu1 %534 }
 0x348   :  { %565 = vrot.lane.b32.xlu0 %v548_v0, %s1474_s8  ;;  %567 = vrot.lane.b32.xlu1 %v549_v1, %s1474_s8  ;;  %v550_v5 = vmax.f32 %v1708_v54, %v535_v2 }
 0x349   :  { %v537_v3 = vpop.permute.xlu0 %536 }
 0x34a   :  { %v551_v6 = vmax.f32 %v1711_v55, %v537_v3 }
 0x34c   :  { %569 = vrot.lane.b32.xlu0 %v550_v5, %s1474_s8  ;;  %571 = vrot.lane.b32.xlu1 %v551_v6, %s1474_s8 }
 0x3b2   :  { %v560_v8 = vpop.permute.xlu1 %559 }
 0x3b3   :  { %v580_v13 = vmax.f32 %v545_v58, %v560_v8 }
 0x3b5   :  { %594 = vrot.lane.b32.xlu0 %v580_v13, %s1477_s9 }
 0x3b6   :  { %v564_v14 = vpop.permute.xlu1 %563  ;;  %v562_v15 = vpop.permute.xlu0 %561 }
 0x3b7   :  { %v582_v16 = vmax.f32 %v547_v60, %v564_v14  ;;  %v581_v18 = vmax.f32 %v546_v61, %v562_v15 }
 0x3b9   :  { %598 = vrot.lane.b32.xlu0 %v582_v16, %s1477_s9  ;;  %596 = vrot.lane.b32.xlu1 %v581_v18, %s1477_s9 }
 0x3ba   :  { %v568_v19 = vpop.permute.xlu1 %567  ;;  %v566_v20 = vpop.permute.xlu0 %565 }
 0x3bb   :  { %v584_v22 = vmax.f32 %v549_v1, %v568_v19  ;;  %v583_v23 = vmax.f32 %v548_v0, %v566_v20 }
 0x3bd   :  { %602 = vrot.lane.b32.xlu0 %v584_v22, %s1477_s9  ;;  %600 = vrot.lane.b32.xlu1 %v583_v23, %s1477_s9 }
 0x3be   :  { %v572_v24 = vpop.permute.xlu1 %571  ;;  %v570_v25 = vpop.permute.xlu0 %569 }
 0x3bf   :  { %v586_v26 = vmax.f32 %v551_v6, %v572_v24  ;;  %v585_v30 = vmax.f32 %v550_v5, %v570_v25 }
 0x3c1   :  { %606 = vrot.lane.b32.xlu0 %v586_v26, %s1477_s9  ;;  %604 = vrot.lane.b32.xlu1 %v585_v30, %s1477_s9 }
 0x3c5   :  { %1348 = vrot.lane.b32.xlu0 %v1347_v17, %s1478_s1  ;;  %1343 = vrot.lane.b32.xlu1 %v1342_v21, %s1478_s1 }
 0x3c9   :  { %957 = vrot.lane.b32.xlu0 %v1677_v27, %s1478_s1  ;;  %1353 = vrot.lane.b32.xlu1 %v1352_v31, %s1478_s1 }
 0x427   :  { %v595_v32 = vpop.permute.xlu0 %594 }
 0x428   :  { %v615_v33 = vmax.f32 %v580_v13, %v595_v32 }
 0x42a   :  { %1267 = vmatmul.mubr.msk.f32.vlgmr.msra.gmra.mrb[12].mxu1 %vm623_vm3, %v615_v33 }
 0x42b   :  { %v597_v34 = vpop.permute.xlu1 %596  ;;  %1269 = vmatprep.mubr.msk.f32.mxu1 %vm1476_vm2, %v1475_v7  ;;  %v599_v10 = vpop.permute.xlu0 %598 }
 0x42c   :  { %v616_v9 = vmax.f32 %v581_v18, %v597_v34  ;;  %v617_v11 = vmax.f32 %v582_v16, %v599_v10 }
 0x42e   :  { %1270 = vmatmul.mubr.msk.f32.gmra.mrb[14].mxu1 %vm623_vm3, %v616_v9 }
 0x42f   :  { %1272 = vmatprep.mubr.msk.f32.mxu1 %vm1476_vm2, %v1475_v7  ;;  %v601_v12 = vpop.permute.xlu1 %600  ;;  %v603_v21 = vpop.permute.xlu0 %602 }
 0x430   :  { %v618_v17 = vmax.f32 %v583_v23, %v601_v12  ;;  %v619_v27 = vmax.f32 %v584_v22, %v603_v21 }
 0x432   :  { %1273 = vmatmul.mubr.msk.f32.gmra.mrb[16].mxu1 %vm623_vm3, %v617_v11 }
 0x433   :  { %1275 = vmatprep.mubr.msk.f32.mxu1 %vm1476_vm2, %v1475_v7  ;;  %v605_v28 = vpop.permute.xlu1 %604  ;;  %v607_v31 = vpop.permute.xlu0 %606 }
 0x434   :  { %v620_v29 = vmax.f32 %v585_v30, %v605_v28  ;;  %v621_v40 = vmax.f32 %v586_v26, %v607_v31 }
 0x436   :  { %1276 = vmatmul.mubr.msk.f32.gmra.mrb[18].mxu1 %vm623_vm3, %v618_v17 }
 0x437   :  { %1278 = vmatprep.mubr.msk.f32.mxu1 %vm1476_vm2, %v1475_v7 }
 0x43a   :  { %1279 = vmatmul.mubr.msk.f32.gmra.mrb[20].mxu1 %vm623_vm3, %v619_v27 }
 0x43b   :  { %1281 = vmatprep.mubr.msk.f32.mxu1 %vm1476_vm2, %v1475_v7 }
 0x43e   :  { %1282 = vmatmul.mubr.msk.f32.gmra.mrb[22].mxu1 %vm623_vm3, %v620_v29 }
 0x43f   :  { %1284 = vmatprep.mubr.msk.f32.mxu1 %vm1476_vm2, %v1475_v7 }
 0x442   :  { %1285 = vmatmul.mubr.msk.f32.gmra.mrb[24].mxu1 %vm623_vm3, %v621_v40 }
 0x4fd   :  { %v715_v57 = vpop.f32.mrb[12].mxu1 }
 0x4fe   :  { %v749_v58 = vsub.f32 %v1696_v41, %v715_v57  ;;  %v1268_v59 = vpop.f32.mrb[13].mxu1 }
 0x500   :  { %v756_v60 = vmul.f32 1.442695, %v749_v58 }
 0x501   :  { %v720_v61 = vpop.f32.mrb[14].mxu1 }
 0x502   :  { %1396 = vpow2.f32 %v756_v60  ;;  %v750_v62 = vsub.f32 %v1702_v45, %v720_v61  ;;  %v1271_v63 = vpop.f32.mrb[15].mxu1 }
 0x504   :  { %v758_v0 = vmul.f32 1.442695, %v750_v62 }
 0x505   :  { %v725_v1 = vpop.f32.mrb[16].mxu1 }
 0x506   :  { %1398 = vpow2.f32 %v758_v0  ;;  %v751_v2 = vsub.f32 %v1694_v36, %v725_v1  ;;  %v1274_v3 = vpop.f32.mrb[17].mxu1 }
 0x508   :  { %v760_v4 = vmul.f32 1.442695, %v751_v2 }
 0x509   :  { %v730_v5 = vpop.f32.mrb[18].mxu1 }
 0x50a   :  { %1400 = vpow2.f32 %v760_v4  ;;  %v752_v6 = vsub.f32 %v1700_v44, %v730_v5  ;;  %v1277_v8 = vpop.f32.mrb[19].mxu1 }
 0x50c   :  { %v1775_v41 = vpop.eup %1396  ;;  %v762_v13 = vmul.f32 1.442695, %v752_v6 }
 0x50d   :  { %v735_v14 = vpop.f32.mrb[20].mxu1  ;;  %1296 = vmatmul.mubr.msk.f32.vlgmr.msra.gmra.mrb[12].mxu0 %vm774_vm4, %v1775_v41 }
 0x50e   :  { %1402 = vpow2.f32 %v762_v13  ;;  %v753_v45 = vsub.f32 %v1706_v48, %v735_v14  ;;  %v1280_v15 = vpop.f32.mrb[21].mxu1  ;;  %1298 = vmatprep.mubr.msk.f32.mxu0 %vm1476_vm2, %v1475_v7 }
 0x510   :  { %v1399_v36 = vpop.eup %1398  ;;  %v764_v16 = vmul.f32 1.442695, %v753_v45 }
 0x511   :  { %v740_v18 = vpop.f32.mrb[22].mxu1  ;;  %1299 = vmatmul.mubr.msk.f32.gmra.mrb[14].mxu0 %vm774_vm4, %v1399_v36 }
 0x512   :  { %1404 = vpow2.f32 %v764_v16  ;;  %v754_v44 = vsub.f32 %v1708_v54, %v740_v18  ;;  %v1283_v19 = vpop.f32.mrb[23].mxu1  ;;  %1301 = vmatprep.mubr.msk.f32.mxu0 %vm1476_vm2, %v1475_v7 }
 0x514   :  { %v1786_v20 = vpop.eup %1400  ;;  %v766_v22 = vmul.f32 1.442695, %v754_v44 }
 0x515   :  { %v745_v48 = vpop.f32.mrb[24].mxu1  ;;  %1302 = vmatmul.mubr.msk.f32.gmra.mrb[16].mxu0 %vm774_vm4, %v1786_v20 }
 0x516   :  { %1406 = vpow2.f32 %v766_v22  ;;  %v755_v23 = vsub.f32 %v1711_v55, %v745_v48  ;;  %v1286_v24 = vpop.f32.mrb[25].mxu1  ;;  %1304 = vmatprep.mubr.msk.f32.mxu0 %vm1476_vm2, %v1475_v7 }
 0x518   :  { %v1403_v25 = vpop.eup %1402  ;;  %v768_v54 = vmul.f32 1.442695, %v755_v23 }
 0x519   :  { %1305 = vmatmul.mubr.msk.f32.gmra.mrb[18].mxu0 %vm774_vm4, %v1403_v25 }
 0x51a   :  { %1408 = vpow2.f32 %v768_v54  ;;  %1307 = vmatprep.mubr.msk.f32.mxu0 %vm1476_vm2, %v1475_v7 }
 0x51c   :  { %v1796_v26 = vpop.eup %1404 }
 0x51d   :  { %1308 = vmatmul.mubr.msk.f32.gmra.mrb[20].mxu0 %vm774_vm4, %v1796_v26 }
 0x51e   :  { %1310 = vmatprep.mubr.msk.f32.mxu0 %vm1476_vm2, %v1475_v7 }
 0x520   :  { %v1802_v55 = vpop.eup %1406 }
 0x521   :  { %1311 = vmatmul.mubr.msk.f32.gmra.mrb[22].mxu0 %vm774_vm4, %v1802_v55 }
 0x522   :  { %1313 = vmatprep.mubr.msk.f32.mxu0 %vm1476_vm2, %v1475_v7 }
 0x524   :  { %v1808_v30 = vpop.eup %1408 }
 0x525   :  { %1314 = vmatmul.mubr.msk.f32.gmra.mrb[24].mxu0 %vm774_vm4, %v1808_v30 }
 0x5e0   :  { %v862_v32 = vpop.f32.mrb[12].mxu0 }
 0x5e1   :  { %1410 = vrcp.f32 %v862_v32  ;;  %v1297_v33 = vpop.f32.mrb[13].mxu0 }
 0x5e4   :  { %v867_v34 = vpop.f32.mrb[14].mxu0 }
 0x5e5   :  { %1412 = vrcp.f32 %v867_v34  ;;  %v1300_v9 = vpop.f32.mrb[15].mxu0 }
 0x5e8   :  { %v872_v10 = vpop.f32.mrb[16].mxu0 }
 0x5e9   :  { %1414 = vrcp.f32 %v872_v10  ;;  %v1303_v11 = vpop.f32.mrb[17].mxu0 }
 0x5eb   :  { %v1411_v12 = vpop.eup %1410 }
 0x5ec   :  { %v903_v17 = vmul.f32 %v1411_v12, %v862_v32  ;;  %v877_v21 = vpop.f32.mrb[18].mxu0  ;;  %v1349_v32 = vpop.permute.xlu0 %1348 }
 0x5ed   :  { %1416 = vrcp.f32 %v877_v21  ;;  %v1306_v27 = vpop.f32.mrb[19].mxu0 }
 0x5ee   :  { %v910_v7 = vsub.f32 2.0, %v903_v17 }
 0x5ef   :  { %v1413_v28 = vpop.eup %1412 }
 0x5f0   :  { %v904_v29 = vmul.f32 %v1413_v28, %v867_v34  ;;  %v882_v31 = vpop.f32.mrb[20].mxu0  ;;  %v917_v42 = vmul.f32 %v1411_v12, %v910_v7  ;;  %v958_v27 = vpop.permute.xlu0 %957 }
 0x5f1   :  { %1418 = vrcp.f32 %v882_v31  ;;  %v1309_v40 = vpop.f32.mrb[21].mxu0 }
 0x5f2   :  { %v911_v43 = vsub.f32 2.0, %v904_v29  ;;  %v924_v58 = vmul.f32 %v1775_v41, %v917_v42  ;;  %v1350_v40 = vunpack.i.l.bf16 %v1349_v32 }
 0x5f3   :  { %v1415_v46 = vpop.eup %1414 }
 0x5f4   :  { %v918_v47 = vmul.f32 %v1413_v28, %v911_v43  ;;  %v905_v49 = vmul.f32 %v1415_v46, %v872_v10  ;;  %v887_v52 = vpop.f32.mrb[22].mxu0  ;;  %v931_v33 = vmul.f32 %v924_v58, %v1627_v37 }
 0x5f5   :  { %1420 = vrcp.f32 %v887_v52  ;;  %v1312_v56 = vpop.f32.mrb[23].mxu0 }
 0x5f6   :  { %v912_v57 = vsub.f32 2.0, %v905_v49  ;;  %v925_v59 = vmul.f32 %v1399_v36, %v918_v47 }
 0x5f7   :  { %v1417_v60 = vpop.eup %1416 }
 0x5f8   :  { %v906_v61 = vmul.f32 %v1417_v60, %v877_v21  ;;  %v892_v62 = vpop.f32.mrb[24].mxu0  ;;  %v1357_v63 = vpack.i.bf16 %v925_v59, %v924_v58  ;;  %v919_v1 = vmul.f32 %v1415_v46, %v912_v57  ;;  %v932_v34 = vmul.f32 %v925_v59, %v1629_v38 }
 0x5f9   :  { %1422 = vrcp.f32 %v892_v62  ;;  %v1315_v0 = vpop.f32.mrb[25].mxu0 }
 0x5fa   :  { %v913_v2 = vsub.f32 2.0, %v906_v61  ;;  %1358 = vrot.lane.b32.xlu1 %v1357_v63, %s1480_s10  ;;  %v926_v8 = vmul.f32 %v1786_v20, %v919_v1 }
 0x5fb   :  { %v1419_v3 = vpop.eup %1418 }
 0x5fc   :  { %v920_v4 = vmul.f32 %v1417_v60, %v913_v2  ;;  %v907_v5 = vmul.f32 %v1419_v3, %v882_v31  ;;  %v933_v28 = vmul.f32 %v926_v8, %v1631_v39  ;;  %v1351_v31 = vunpack.i.h.bf16 %v1349_v32 }
 0x5fe   :  { %v914_v6 = vsub.f32 2.0, %v907_v5  ;;  %v927_v13 = vmul.f32 %v1403_v25, %v920_v4  ;;  %v1344_v25 = vpop.permute.xlu1 %1343  ;;  %v996_v47 = vsel %vm774_vm4, %v933_v28, %v1350_v40 }
 0x5ff   :  { %v1421_v14 = vpop.eup %1420  ;;  %v1346_v9 = vunpack.i.h.bf16 %v1344_v25  ;;  %v1345_v10 = vunpack.i.l.bf16 %v1344_v25 }
 0x600   :  { %v908_v41 = vmul.f32 %v1421_v14, %v887_v52  ;;  %v1362_v45 = vpack.i.bf16 %v927_v13, %v926_v8  ;;  %v921_v15 = vmul.f32 %v1419_v3, %v914_v6  ;;  %v934_v29 = vmul.f32 %v927_v13, %v1625_v35 }
 0x601   :  { %v994_v12 = vsel %vm774_vm4, %v931_v33, %v1345_v10  ;;  %v995_v17 = vsel %vm774_vm4, %v932_v34, %v1346_v9 }
 0x602   :  { %v915_v36 = vsub.f32 2.0, %v908_v41  ;;  %1363 = vrot.lane.b32.xlu0 %v1362_v45, %s1480_s10  ;;  %v928_v22 = vmul.f32 %v1796_v26, %v921_v15  ;;  %v1354_v54 = vpop.permute.xlu1 %1353  ;;  %v997_v49 = vsel %vm774_vm4, %v934_v29, %v1351_v31 }
 0x603   :  { %v1423_v16 = vpop.eup %1422  ;;  %v1356_v61 = vunpack.i.h.bf16 %v1354_v54 }
 0x604   :  { %v922_v18 = vmul.f32 %v1421_v14, %v915_v36  ;;  %v909_v44 = vmul.f32 %v1423_v16, %v892_v62  ;;  %v935_v35 = vmul.f32 %v928_v22, %v1639_v51  ;;  %v1355_v62 = vunpack.i.l.bf16 %v1354_v54 }
 0x606   :  { %v916_v19 = vsub.f32 2.0, %v909_v44  ;;  %v929_v48 = vmul.f32 %v1802_v55, %v922_v18  ;;  %v998_v2 = vsel %vm774_vm4, %v935_v35, %v1355_v62 }
 0x608   :  { %v923_v23 = vmul.f32 %v1423_v16, %v916_v19  ;;  %v1367_v24 = vpack.i.bf16 %v929_v48, %v928_v22  ;;  %v936_v59 = vmul.f32 %v929_v48, %v1641_v53 }
 0x60a   :  { %1368 = vrot.lane.b32.xlu1 %v1367_v24, %s1480_s10  ;;  %v930_v20 = vmul.f32 %v1808_v30, %v923_v23  ;;  %v999_v3 = vsel %vm774_vm4, %v936_v59, %v1356_v61 }
 0x60c   :  { %985 = vrot.lane.b32.xlu0 %v930_v20, %s1480_s10  ;;  %v937_v60 = vmul.f32 %v930_v20, %v1637_v50 }
 0x60e   :  { %v1000_v4 = vsel %vm774_vm4, %v937_v60, %v958_v27 }
 0x66c   :  { %v1359_v11 = vpop.permute.xlu1 %1358 }
 0x66d   :  { %v1361_v26 = vunpack.i.h.bf16 %v1359_v11  ;;  %v1360_v55 = vunpack.i.l.bf16 %v1359_v11 }
 0x66f   :  { %v1002_v30 = vsel %vm1001_vm5, %v994_v12, %v1360_v55  ;;  %v1003_v21 = vsel %vm1001_vm5, %v995_v17, %v1361_v26 }
 0x670   :  { %v1010_v37 = vsel %vm1009_vm6, %v1002_v30, 0.0  ;;  %v1011_v38 = vsel %vm1009_vm6, %v1003_v21, 0.0 }
 0x671   :  { %v1135_v7 = vpack.c.bf16 %v1011_v38, %v1010_v37 }
 0x673   :  { %1136 = vst [vmem:[#allocation5] sm:$0xff] %v1135_v7  }
 0x674   :  { %v1364_v42 = vpop.permute.xlu0 %1363 }
 0x675   :  { %v1366_v43 = vunpack.i.h.bf16 %v1364_v42  ;;  %v1365_v46 = vunpack.i.l.bf16 %v1364_v42 }
 0x677   :  { %v1004_v52 = vsel %vm1001_vm5, %v996_v47, %v1365_v46  ;;  %v1005_v56 = vsel %vm1001_vm5, %v997_v49, %v1366_v43 }
 0x678   :  { %v1012_v57 = vsel %vm1009_vm6, %v1004_v52, 0.0  ;;  %v1013_v39 = vsel %vm1009_vm6, %v1005_v56, 0.0 }
 0x679   :  { %v1140_v58 = vpack.c.bf16 %v1013_v39, %v1012_v57 }
 0x67b   :  { %1147 = vst [vmem:[#allocation5 + $0x8] sm:$0xff] %v1140_v58  }
 0x67c   :  { %v1369_v63 = vpop.permute.xlu1 %1368 }
 0x67d   :  { %v1371_v0 = vunpack.i.h.bf16 %v1369_v63  ;;  %v1370_v1 = vunpack.i.l.bf16 %v1369_v63 }
 0x67e   :  { %v986_v5 = vpop.permute.xlu0 %985 }
 0x67f   :  { %v1006_v51 = vsel %vm1001_vm5, %v998_v2, %v1370_v1  ;;  %v1007_v53 = vsel %vm1001_vm5, %v999_v3, %v1371_v0  ;;  %v1008_v50 = vsel %vm1001_vm5, %v1000_v4, %v986_v5 }
 0x680   :  { %v1014_v6 = vsel %vm1009_vm6, %v1006_v51, 0.0  ;;  %v1015_v8 = vsel %vm1009_vm6, %v1007_v53, 0.0  ;;  %v1016_v13 = vsel %vm1009_vm6, %v1008_v50, 0.0 }
 0x681   :  { %v1145_v14 = vpack.c.bf16 %v1015_v8, %v1014_v6  ;;  %v1131_v41 = vpack.c.bf16 %v1016_v13, %v1016_v13 }
 0x683   :  { %1148 = vst [vmem:[#allocation5 + $0x10] sm:$0xff] %v1145_v14   ;;  %1052 = vst [vmem:[#allocation5 + $0x18] sm:$0xf] %v1131_v41 }
 0x684   :  { %1457 = shalt.err (!%p1454_p12)
}
 0x685   :  { %s1458_s2 = scalar_lea.hbm %s1868_s11, 448 }
 0x686   :  { %p1459_p13 = scmp.ne.s32.totalorder %s1868_s11, %s1458_s2  ;;  %p1462_p0 = scmp.lt.u32.totalorder %s1458_s2, %s1868_s11 }
 0x688   :  { %p1464_p1 = pnand %p1462_p0, %p1459_p13 }
 0x68a   :  { %1467 = shalt.err (!%p1464_p1)
}
 0x68b   :  { %s1482_s17 = smov 64   ;;  %s1483_s5 = smov 4  }
 0x68c   :  { %1064 = dma.vmem_to_hbm [thread:$0]  %s1059_s30, 448, %s1868_s11, [#allocation4], %s1482_s17, %s1482_s17, %s1483_s5  }
 0x68d   :  { %1470 = dma.done.wait [#allocation4], 448  }
 0x68e   :  { %1471 = vsyncadd [#allocation4], 4294966848 }
 0x68f   :  { %1068 = vsyncpa [#allocation3], 1 }
 0x690   :  { %1069 = vsyncpa [#allocation4], 1 }

</bundles_post_ra>
